<compile_context>
chip_gen: v6e
topology: v6e:2x2x1
jax: 0.10.0
libtpu: 0.0.40
codegen_flags: <defaults>
</compile_context>

<pallas_src>
import functools
import math

import jax
import jax.numpy as jnp
from jax.experimental import pallas as pl
from jax.experimental.pallas import tpu as pltpu


def _gate_kernel(w_ref, u_ref, x_ref, h_ref, b_ref, o_ref, acc_ref, *, activation):
    k = pl.program_id(2)

    @pl.when(k == 0)
    def _():
        acc_ref[...] = jnp.zeros_like(acc_ref)

    # Two MXU matmuls, accumulated in f32.
    acc_ref[...] += jnp.dot(w_ref[...], x_ref[...],
                            preferred_element_type=jnp.float32)
    acc_ref[...] += jnp.dot(u_ref[...], h_ref[...],
                            preferred_element_type=jnp.float32)

    @pl.when(k == pl.num_programs(2) - 1)
    def _():
        z = acc_ref[...] + b_ref[...].astype(jnp.float32)
        if activation == "sigmoid":
            y = jax.nn.sigmoid(z)          # exp -> EUP slot
        elif activation == "tanh":
            y = jnp.tanh(z)                # tanh -> EUP slot
        else:
            y = z
        o_ref[...] = y.astype(o_ref.dtype)


def _round_up(a, b):
    return (a + b - 1) // b * b


def mat_gru_gate_forward(W, U, bias, x, hidden, activation="sigmoid",
                         tm=256, tn=256, tk=256):
    """out = activation(W @ x + U @ hidden + bias)."""
    M, K = W.shape
    Kx, N = x.shape
    assert K == Kx
    assert U.shape == (M, K)
    assert hidden.shape == (K, N)
    assert bias.shape == (M, N)

    # Clamp tiles to the array dims: full-dim blocks are always legal; partial
    # blocks (tm mult. of 8, tn/tk mult. of 128 by default) need padding below.
    tm = M if M <= tm else tm
    tn = N if N <= tn else tn
    tk = K if K <= tk else tk

    Mp, Np, Kp = _round_up(M, tm), _round_up(N, tn), _round_up(K, tk)
    if (Mp, Kp) != (M, K):
        W = jnp.pad(W, ((0, Mp - M), (0, Kp - K)))
        U = jnp.pad(U, ((0, Mp - M), (0, Kp - K)))
    if (Kp, Np) != (K, N):
        x = jnp.pad(x, ((0, Kp - K), (0, Np - N)))
        hidden = jnp.pad(hidden, ((0, Kp - K), (0, Np - N)))
    if (Mp, Np) != (M, N):
        bias = jnp.pad(bias, ((0, Mp - M), (0, Np - N)))

    kernel = functools.partial(_gate_kernel, activation=activation)

    out = pl.pallas_call(
        kernel,
        out_shape=jax.ShapeDtypeStruct((Mp, Np), x.dtype),
        grid_spec=pltpu.PrefetchScalarGridSpec(
            num_scalar_prefetch=0,
            grid=(Mp // tm, Np // tn, Kp // tk),
            in_specs=[
                pl.BlockSpec((tm, tk), lambda i, j, k: (i, k)),  # W
                pl.BlockSpec((tm, tk), lambda i, j, k: (i, k)),  # U
                pl.BlockSpec((tk, tn), lambda i, j, k: (k, j)),  # x
                pl.BlockSpec((tk, tn), lambda i, j, k: (k, j)),  # hidden
                pl.BlockSpec((tm, tn), lambda i, j, k: (i, j)),  # bias (K-invariant)
            ],
            out_specs=pl.BlockSpec((tm, tn), lambda i, j, k: (i, j)),
            scratch_shapes=[pltpu.VMEM((tm, tn), jnp.float32)],
        ),
        compiler_params=pltpu.CompilerParams(
            dimension_semantics=("parallel", "parallel", "arbitrary"),
            vmem_limit_bytes=48 << 20,  # safe on v5e/v6e (128 MiB) and v7x (64 MiB)
        ),
    )(W, U, x, hidden, bias)

    if (Mp, Np) != (M, N):
        out = out[:M, :N]
    return out


def mat_gru_gate_reference(W, U, bias, x, hidden, activation="sigmoid"):
    z = W @ x + U @ hidden + bias
    if activation == "sigmoid":
        return jax.nn.sigmoid(z)
    if activation == "tanh":
        return jnp.tanh(z)
    return z


if __name__ == "__main__":
    key = jax.random.PRNGKey(0)
    rows, cols = 32, 16  # small shapes consistent with mat_GRU_gate(rows, cols)

    k_w, k_u, k_b, k_x, k_h = jax.random.split(key, 5)
    stdv = 1.0 / math.sqrt(rows)  # reset_param: uniform(-1/sqrt(cols of W), +...)
    W = jax.random.uniform(k_w, (rows, rows), jnp.float32, -stdv, stdv)
    U = jax.random.uniform(k_u, (rows, rows), jnp.float32, -stdv, stdv)
    # bias is a trainable Parameter (init zeros); use a small random value to
    # exercise the bias path.
    bias = 0.1 * jax.random.normal(k_b, (rows, cols), jnp.float32)
    x = jax.random.normal(k_x, (rows, cols), jnp.float32)
    hidden = jax.random.normal(k_h, (rows, cols), jnp.float32)

    out = mat_gru_gate_forward(W, U, bias, x, hidden, activation="sigmoid")
    out = jax.block_until_ready(out)

    ref = mat_gru_gate_reference(W, U, bias, x, hidden, activation="sigmoid")
    assert out.shape == (rows, cols)
    assert jnp.allclose(out, ref, atol=1e-5, rtol=1e-5)

    print("KERNEL_OK")
</pallas_src>

<mosaic_0001>
module attributes {stable_mosaic.version = 11 : i64} {
  func.func @_gate_kernel(%arg0: i32, %arg1: i32, %arg2: i32, %arg3: memref<32x32xf32, #tpu.memory_space<vmem>>, %arg4: memref<32x32xf32, #tpu.memory_space<vmem>>, %arg5: memref<32x16xf32, #tpu.memory_space<vmem>>, %arg6: memref<32x16xf32, #tpu.memory_space<vmem>>, %arg7: memref<32x16xf32, #tpu.memory_space<vmem>>, %arg8: memref<32x16xf32, #tpu.memory_space<vmem>>, %arg9: memref<32x16xf32, #tpu.memory_space<vmem>>) attributes {dimension_semantics = [#tpu.dimension_semantics<parallel>, #tpu.dimension_semantics<parallel>, #tpu.dimension_semantics<arbitrary>], iteration_bounds = array<i64: 1, 1, 1>, scalar_prefetch = 0 : i64, scratch_operands = 1 : i64, tpu.core_type = #tpu.core_type<tc>, window_params = [{transform_indices = @transform_0, window_bounds = array<i64: 32, 32>}, {transform_indices = @transform_1, window_bounds = array<i64: 32, 32>}, {transform_indices = @transform_2, window_bounds = array<i64: 32, 16>}, {transform_indices = @transform_3, window_bounds = array<i64: 32, 16>}, {transform_indices = @transform_4, window_bounds = array<i64: 32, 16>}, {transform_indices = @transform_5, window_bounds = array<i64: 32, 16>}]} {
    %c0_i32 = arith.constant 0 : i32
    %0 = arith.cmpi eq, %arg2, %c0_i32 : i32
    %1 = arith.extui %0 : i1 to i32
    %c0_i32_0 = arith.constant 0 : i32
    %2 = arith.cmpi ne, %1, %c0_i32_0 : i32
    scf.if %2 {
      %cst_19 = arith.constant 0.000000e+00 : f32
      %18 = vector.broadcast %cst_19 : f32 to vector<32x16xf32>
      %c0_20 = arith.constant 0 : index
      %c0_21 = arith.constant 0 : index
      %19 = vector.load %arg9[%c0_20, %c0_21] : memref<32x16xf32, #tpu.memory_space<vmem>>, vector<32x16xf32>
      tpu.vector_store %arg9[%c0_20, %c0_21], %18 {strides = array<i32>} : memref<32x16xf32, #tpu.memory_space<vmem>>, vector<32x16xf32>,
    } else {
    }
    %c0 = arith.constant 0 : index
    %c0_1 = arith.constant 0 : index
    %3 = vector.load %arg9[%c0, %c0_1] : memref<32x16xf32, #tpu.memory_space<vmem>>, vector<32x16xf32>
    %c0_2 = arith.constant 0 : index
    %c0_3 = arith.constant 0 : index
    %4 = vector.load %arg3[%c0_2, %c0_3] : memref<32x32xf32, #tpu.memory_space<vmem>>, vector<32x32xf32>
    %c0_4 = arith.constant 0 : index
    %c0_5 = arith.constant 0 : index
    %5 = vector.load %arg5[%c0_4, %c0_5] : memref<32x16xf32, #tpu.memory_space<vmem>>, vector<32x16xf32>
    %cst = arith.constant dense<0.000000e+00> : vector<32x16xf32>
    %6 = tpu.matmul %4, %5, %cst {dimension_numbers = #tpu.dot_dimension_numbers<[1], [0], [0], [1], [0, 0, 1, 1], [], []>} : vector<32x32xf32>, vector<32x16xf32>, vector<32x16xf32> -> vector<32x16xf32>
    %7 = arith.addf %3, %6 : vector<32x16xf32>
    %c0_6 = arith.constant 0 : index
    %c0_7 = arith.constant 0 : index
    %8 = vector.load %arg9[%c0_6, %c0_7] : memref<32x16xf32, #tpu.memory_space<vmem>>, vector<32x16xf32>
    tpu.vector_store %arg9[%c0_6, %c0_7], %7 {strides = array<i32>} : memref<32x16xf32, #tpu.memory_space<vmem>>, vector<32x16xf32>,
    %c0_8 = arith.constant 0 : index
    %c0_9 = arith.constant 0 : index
    %9 = vector.load %arg9[%c0_8, %c0_9] : memref<32x16xf32, #tpu.memory_space<vmem>>, vector<32x16xf32>
    %c0_10 = arith.constant 0 : index
    %c0_11 = arith.constant 0 : index
    %10 = vector.load %arg4[%c0_10, %c0_11] : memref<32x32xf32, #tpu.memory_space<vmem>>, vector<32x32xf32>
    %c0_12 = arith.constant 0 : index
    %c0_13 = arith.constant 0 : index
    %11 = vector.load %arg6[%c0_12, %c0_13] : memref<32x16xf32, #tpu.memory_space<vmem>>, vector<32x16xf32>
    %cst_14 = arith.constant dense<0.000000e+00> : vector<32x16xf32>
    %12 = tpu.matmul %10, %11, %cst_14 {dimension_numbers = #tpu.dot_dimension_numbers<[1], [0], [0], [1], [0, 0, 1, 1], [], []>} : vector<32x32xf32>, vector<32x16xf32>, vector<32x16xf32> -> vector<32x16xf32>
    %13 = arith.addf %9, %12 : vector<32x16xf32>
    %c0_15 = arith.constant 0 : index
    %c0_16 = arith.constant 0 : index
    %14 = vector.load %arg9[%c0_15, %c0_16] : memref<32x16xf32, #tpu.memory_space<vmem>>, vector<32x16xf32>
    tpu.vector_store %arg9[%c0_15, %c0_16], %13 {strides = array<i32>} : memref<32x16xf32, #tpu.memory_space<vmem>>, vector<32x16xf32>,
    %c0_i32_17 = arith.constant 0 : i32
    %15 = arith.cmpi eq, %arg2, %c0_i32_17 : i32
    %16 = arith.extui %15 : i1 to i32
    %c0_i32_18 = arith.constant 0 : i32
    %17 = arith.cmpi ne, %16, %c0_i32_18 : i32
    scf.if %17 {
      %c0_19 = arith.constant 0 : index
      %c0_20 = arith.constant 0 : index
      %18 = vector.load %arg9[%c0_19, %c0_20] : memref<32x16xf32, #tpu.memory_space<vmem>>, vector<32x16xf32>
      %c0_21 = arith.constant 0 : index
      %c0_22 = arith.constant 0 : index
      %19 = vector.load %arg7[%c0_21, %c0_22] : memref<32x16xf32, #tpu.memory_space<vmem>>, vector<32x16xf32>
      %20 = arith.addf %18, %19 : vector<32x16xf32>
      %21 = arith.negf %20 : vector<32x16xf32>
      %22 = math.exp %21 : vector<32x16xf32>
      %cst_23 = arith.constant 1.000000e+00 : f32
      %23 = vector.broadcast %cst_23 : f32 to vector<32x16xf32>
      %24 = arith.addf %23, %22 : vector<32x16xf32>
      %25 = arith.divf %23, %24 : vector<32x16xf32>
      %c0_24 = arith.constant 0 : index
      %c0_25 = arith.constant 0 : index
      %26 = vector.load %arg8[%c0_24, %c0_25] : memref<32x16xf32, #tpu.memory_space<vmem>>, vector<32x16xf32>
      tpu.vector_store %arg8[%c0_24, %c0_25], %25 {strides = array<i32>} : memref<32x16xf32, #tpu.memory_space<vmem>>, vector<32x16xf32>,
    } else {
    }
    return
  }
  func.func @transform_0(%arg0: i32, %arg1: i32, %arg2: i32) -> (i32, i32) {
    %c0_i32 = arith.constant 0 : i32
    return %arg0, %arg2 : i32, i32
  }
  func.func @transform_1(%arg0: i32, %arg1: i32, %arg2: i32) -> (i32, i32) {
    %c0_i32 = arith.constant 0 : i32
    return %arg0, %arg2 : i32, i32
  }
  func.func @transform_2(%arg0: i32, %arg1: i32, %arg2: i32) -> (i32, i32) {
    %c0_i32 = arith.constant 0 : i32
    return %arg2, %arg1 : i32, i32
  }
  func.func @transform_3(%arg0: i32, %arg1: i32, %arg2: i32) -> (i32, i32) {
    %c0_i32 = arith.constant 0 : i32
    return %arg2, %arg1 : i32, i32
  }
  func.func @transform_4(%arg0: i32, %arg1: i32, %arg2: i32) -> (i32, i32) {
    %c0_i32 = arith.constant 0 : i32
    return %arg0, %arg1 : i32, i32
  }
  func.func @transform_5(%arg0: i32, %arg1: i32, %arg2: i32) -> (i32, i32) {
    %c0_i32 = arith.constant 0 : i32
    return %arg0, %arg1 : i32, i32
  }
}

</mosaic_0001>

<bundles_post_ra>
// kernel: tpu_custom_call.1
= control target key start
LH: loop header
LB: loop body
LE: loop exit
PB: predicated region body
PF: predicated region fallthrough
CT: control target
= control target key end

     0   :  { %vm41_vm0 = vcmask 261120   ;;  %vm24_vm1 = vcmask 130048   ;;  %v385_v2 = vmov 0.0   ;;  %s512_s2 = inlined_call_operand.vmem [shape: f32[32,16], index: 2, kind: input, shape index: {}]   ;;  %s513_s0 = inlined_call_operand.vmem [shape: f32[32,32], index: 0, kind: input, shape index: {}]   ;;  %s514_s3 = inlined_call_operand.vmem [shape: f32[32,16], index: 3, kind: input, shape index: {}]   ;;  %s515_s1 = inlined_call_operand.vmem [shape: f32[32,32], index: 1, kind: input, shape index: {}]   ;;  %s516_s4 = inlined_call_operand.vmem [shape: f32[32,16], index: 4, kind: input, shape index: {}]   ;;  %s517_s5 = inlined_call_operand.vmem [shape: f32[32,16], index: 5, kind: output, shape index: {}]  }
   0x1   :  { %v40_v0 = vld [vmem:[%s512_s2 + $0x18] sm:$0xff]  ;;  %v39_v1 = vld [vmem:[%s512_s2 + $0x10] sm:$0xff]  ;;  %26 = vst.msk [vmem:[#allocation2 + $0x8] sm:$0xff] %vm24_vm1, %v385_v2  ;;  %25 = vst.msk [vmem:[#allocation2] sm:$0xff] %vm24_vm1, %v385_v2 }
   0x2   :  { %27 = vst.msk [vmem:[#allocation2 + $0x10] sm:$0xff] %vm24_vm1, %v385_v2  ;;  %28 = vst.msk [vmem:[#allocation2 + $0x18] sm:$0xff] %vm24_vm1, %v385_v2  ;;  %340 = vmatprep.subr.mxu0 %v40_v0  ;;  %v33_v3 = vld [vmem:[%s513_s0] sm:$0xff]  ;;  %v38_v4 = vld [vmem:[%s512_s2 + $0x8] sm:$0xff] }
   0x3   :  { %341 = vmatpush3.msra.mxu0 %v40_v0  ;;  %348 = vmatprep.mubr.msk.f32.mxu0 %vm41_vm0, %v33_v3  ;;  %v159_v5 = vld [vmem:[%s514_s3 + $0x18] sm:$0xff]  ;;  %v158_v6 = vld [vmem:[%s514_s3 + $0x10] sm:$0xff]  ;;  %v37_v7 = vld [vmem:[%s512_s2] sm:$0xff] }
   0x4   :  { %342 = vmatprep.subr.mxu0 %v39_v1  ;;  %354 = vmatprep.subr.mxu1 %v159_v5  ;;  %v157_v8 = vld [vmem:[%s514_s3 + $0x8] sm:$0xff]  ;;  %v156_v10 = vld [vmem:[%s514_s3] sm:$0xff]  ;;  %v35_v11 = vld [vmem:[%s513_s0 + $0x10] sm:$0xff] }
   0x5   :  { %343 = vmatpush3.msra.mxu0 %v39_v1  ;;  %355 = vmatpush3.msra.mxu1 %v159_v5  ;;  %v34_v9 = vld [vmem:[%s513_s0 + $0x8] sm:$0xff]  ;;  %v152_v12 = vld [vmem:[%s515_s1] sm:$0xff]  ;;  %v36_v14 = vld [vmem:[%s513_s0 + $0x18] sm:$0xff] }
   0x6   :  { %344 = vmatprep.subr.mxu0 %v38_v4  ;;  %356 = vmatprep.subr.mxu1 %v158_v6  ;;  %v153_v13 = vld [vmem:[%s515_s1 + $0x8] sm:$0xff]  ;;  %v154_v15 = vld [vmem:[%s515_s1 + $0x10] sm:$0xff]  ;;  %v155_v16 = vld [vmem:[%s515_s1 + $0x18] sm:$0xff] }
   0x7   :  { %345 = vmatpush3.msra.mxu0 %v38_v4  ;;  %357 = vmatpush3.msra.mxu1 %v158_v6  ;;  %v273_v41 = vld [vmem:[%s516_s4 + $0x8] sm:$0xff]  ;;  %v272_v43 = vld [vmem:[%s516_s4] sm:$0xff]  ;;  %v275_v46 = vld [vmem:[%s516_s4 + $0x18] sm:$0xff] }
   0x8   :  { %346 = vmatprep.subr.mxu0 %v37_v7  ;;  %358 = vmatprep.subr.mxu1 %v157_v8  ;;  %v30_v17 = vld [vmem:[#allocation2 + $0x8] sm:$0xff]  ;;  %v29_v19 = vld [vmem:[#allocation2] sm:$0xff]  ;;  %v274_v50 = vld [vmem:[%s516_s4 + $0x10] sm:$0xff] }
   0x9   :  { %347 = vmatpush3.msra.mxu0 %v37_v7  ;;  %359 = vmatpush3.msra.mxu1 %v157_v8  ;;  %v32_v22 = vld [vmem:[#allocation2 + $0x18] sm:$0xff]  ;;  %v31_v25 = vld [vmem:[#allocation2 + $0x10] sm:$0xff] }
   0xa   :  { %349 = vmatmul.mubr.msk.f32.vlgmr.msra.gmra.mxu0 %vm41_vm0, %v34_v9  ;;  %360 = vmatprep.subr.mxu1 %v156_v10 }
   0xb   :  { %351 = vmatprep.mubr.msk.f32.mxu0 %vm41_vm0, %v35_v11  ;;  %361 = vmatpush3.msra.mxu1 %v156_v10 }
   0xc   :  { %362 = vmatprep.mubr.msk.f32.mxu1 %vm41_vm0, %v152_v12 }
   0xd   :  { %363 = vmatmul.mubr.msk.f32.vlgmr.msra.gmra.mxu1 %vm41_vm0, %v153_v13 }
   0xe   :  { %352 = vmatmul.mubr.msk.f32.gmra.mxu0 %vm41_vm0, %v36_v14  ;;  %365 = vmatprep.mubr.msk.f32.mxu1 %vm41_vm0, %v154_v15 }
  0x11   :  { %366 = vmatmul.mubr.msk.f32.gmra.mxu1 %vm41_vm0, %v155_v16 }
  0xca   :  { %v350_v18 = vpop.f32.mrf.mxu0 }
  0xcb   :  { %v140_v20 = vadd.f32 %v350_v18, %v30_v17 }
  0xcc   :  { %v120_v21 = vpop.f32.mrf.mxu0 }
  0xcd   :  { %145 = vst.msk [vmem:[#allocation2 + $0x8] sm:$0xff] %vm24_vm1, %v140_v20  ;;  %v139_v23 = vadd.f32 %v120_v21, %v29_v19  ;;  %v364_v26 = vpop.f32.mrf.mxu1 }
  0xce   :  { %v353_v24 = vpop.f32.mrf.mxu0 }
  0xcf   :  { %144 = vst.msk [vmem:[#allocation2] sm:$0xff] %vm24_vm1, %v139_v23  ;;  %v142_v27 = vadd.f32 %v353_v24, %v32_v22  ;;  %v238_v30 = vpop.f32.mrf.mxu1 }
  0xd0   :  { %v130_v28 = vpop.f32.mrf.mxu0 }
  0xd1   :  { %147 = vst.msk [vmem:[#allocation2 + $0x18] sm:$0xff] %vm24_vm1, %v142_v27  ;;  %v141_v29 = vadd.f32 %v130_v28, %v31_v25  ;;  %v367_v34 = vpop.f32.mrf.mxu1 }
  0xd3   :  { %146 = vst.msk [vmem:[#allocation2 + $0x10] sm:$0xff] %vm24_vm1, %v141_v29  ;;  %v248_v39 = vpop.f32.mrf.mxu1 }
  0xd4   :  { %v149_v31 = vld [vmem:[#allocation2 + $0x8] sm:$0xff] }
  0xd5   :  { %v258_v32 = vadd.f32 %v364_v26, %v149_v31 }
  0xd6   :  { %v148_v33 = vld [vmem:[#allocation2] sm:$0xff] }
  0xd7   :  { %262 = vst.msk [vmem:[#allocation2 + $0x8] sm:$0xff] %vm24_vm1, %v258_v32  ;;  %v257_v35 = vadd.f32 %v238_v30, %v148_v33 }
  0xd8   :  { %v151_v36 = vld [vmem:[#allocation2 + $0x18] sm:$0xff] }
  0xd9   :  { %261 = vst.msk [vmem:[#allocation2] sm:$0xff] %vm24_vm1, %v257_v35  ;;  %v260_v37 = vadd.f32 %v367_v34, %v151_v36 }
  0xda   :  { %v150_v38 = vld [vmem:[#allocation2 + $0x10] sm:$0xff] }
  0xdb   :  { %264 = vst.msk [vmem:[#allocation2 + $0x18] sm:$0xff] %vm24_vm1, %v260_v37  ;;  %v259_v40 = vadd.f32 %v248_v39, %v150_v38 }
  0xdd   :  { %263 = vst.msk [vmem:[#allocation2 + $0x10] sm:$0xff] %vm24_vm1, %v259_v40 }
  0xde   :  { %v269_v42 = vld [vmem:[#allocation2 + $0x8] sm:$0xff] }
  0xdf   :  { %v277_v44 = vadd.f32 %v273_v41, %v269_v42 }
  0xe0   :  { %v268_v45 = vld [vmem:[#allocation2] sm:$0xff] }
  0xe1   :  { %v321_v47 = vmul.f32 -1.442695, %v277_v44  ;;  %v276_v48 = vadd.f32 %v272_v43, %v268_v45 }
  0xe2   :  { %v271_v49 = vld [vmem:[#allocation2 + $0x18] sm:$0xff] }
  0xe3   :  { %369 = vpow2.f32 %v321_v47  ;;  %v320_v51 = vmul.f32 -1.442695, %v276_v48  ;;  %v279_v52 = vadd.f32 %v275_v46, %v271_v49 }
  0xe4   :  { %v270_v53 = vld [vmem:[#allocation2 + $0x10] sm:$0xff] }
  0xe5   :  { %371 = vpow2.f32 %v320_v51  ;;  %v323_v54 = vmul.f32 -1.442695, %v279_v52  ;;  %v278_v55 = vadd.f32 %v274_v50, %v270_v53 }
  0xe7   :  { %373 = vpow2.f32 %v323_v54  ;;  %v322_v56 = vmul.f32 -1.442695, %v278_v55 }
  0xe9   :  { %375 = vpow2.f32 %v322_v56 }
  0xf0   :  { %v370_v57 = vpop.eup %369 }
  0xf1   :  { %v293_v58 = vadd.f32 1.0, %v370_v57 }
  0xf2   :  { %v372_v59 = vpop.eup %371 }
  0xf3   :  { %377 = vrcp.f32 %v293_v58  ;;  %v292_v60 = vadd.f32 1.0, %v372_v59 }
  0xf4   :  { %v374_v61 = vpop.eup %373 }
  0xf5   :  { %379 = vrcp.f32 %v292_v60  ;;  %v295_v62 = vadd.f32 1.0, %v374_v61 }
  0xf6   :  { %v376_v63 = vpop.eup %375 }
  0xf7   :  { %381 = vrcp.f32 %v295_v62  ;;  %v294_v0 = vadd.f32 1.0, %v376_v63 }
  0xf9   :  { %383 = vrcp.f32 %v294_v0 }
 0x100   :  { %v378_v1 = vpop.eup %377 }
 0x101   :  { %305 = vst.msk [vmem:[%s517_s5 + $0x8] sm:$0xff] %vm24_vm1, %v378_v1 }
 0x102   :  { %v380_v2 = vpop.eup %379 }
 0x103   :  { %304 = vst.msk [vmem:[%s517_s5] sm:$0xff] %vm24_vm1, %v380_v2 }
 0x104   :  { %v382_v3 = vpop.eup %381 }
 0x105   :  { %307 = vst.msk [vmem:[%s517_s5 + $0x18] sm:$0xff] %vm24_vm1, %v382_v3 }
 0x106   :  { %v384_v4 = vpop.eup %383 }
 0x107   :  { %306 = vst.msk [vmem:[%s517_s5 + $0x10] sm:$0xff] %vm24_vm1, %v384_v4 }

</bundles_post_ra>
